<compile_context>
chip_gen: v5e
topology: v5e:2x2
jax: 0.10.0
libtpu: 0.0.40
codegen_flags: <defaults>
</compile_context>

<pallas_src>
import functools

import jax
import jax.numpy as jnp
from jax.experimental import pallas as pl
from jax.experimental.pallas import tpu as pltpu

IN_FEATURES = 4
HIDDEN = 50
LANE = 128        # TPU lane width; all param rows are 128 lanes wide.
K_PAD_IN = 8      # input features padded 4 -> 8 (MXU-friendly, 8-lane aligned)
K_PAD_HID = 64    # hidden padded 50 -> 64 (halves w2 rows vs. padding to 128)

# Packed-parameter row layout (all rows 128 lanes wide, f32):
#   rows [ 0,  8): w1 padded   (rows 0..3, lanes 0..49 non-zero)
#   row    8     : b1          (lanes 0..49 non-zero)
#   rows [16, 80): w2 padded   (rows 16..65, lanes 0..n_action-1 non-zero)
#   row   80     : b2          (lanes 0..n_action-1 non-zero)
_W1_ROW = 0
_B1_ROW = 8
_W2_ROW = 16
_B2_ROW = 80
_PACK_ROWS = 88

_BLOCK_B_MAX = 256  # batch rows per grid step


def _round_up(x, m):
    return (x + m - 1) // m * m


def _mlp_kernel(x_ref, p_ref, o_ref, *, n_action):
    """fc1(4->50 as 8->64) + ReLU + fc2(50->n_action as 64->128), both on MXU."""
    x = x_ref[...]                                            # (bb, 8) f32

    # fc1 on the MXU: (bb, 8) @ (8, 64).  Padded rows/lanes of w1/b1 are zero,
    # so hidden lanes 50..63 stay zero after the ReLU.
    w1 = p_ref[_W1_ROW:_W1_ROW + K_PAD_IN, :K_PAD_HID]        # (8, 64)
    b1 = p_ref[_B1_ROW:_B1_ROW + 1, :K_PAD_HID]               # (1, 64)
    h = jnp.dot(x, w1, preferred_element_type=jnp.float32) + b1
    h = jnp.maximum(h, 0.0)                                   # ReLU, (bb, 64)

    # fc2 on the MXU: (bb, 64) @ (64, 128).  Zero-padded rows of w2 contribute
    # nothing; padded output lanes are b2-pad = 0 and get masked off below.
    w2 = p_ref[_W2_ROW:_W2_ROW + K_PAD_HID, :]                # (64, 128)
    out = jnp.dot(h, w2, preferred_element_type=jnp.float32)
    out = out + p_ref[_B2_ROW:_B2_ROW + 1, :]                 # (bb, 128)

    # Direct masked store of the real action columns (no wrapper-side slice).
    o_ref[...] = out[:, :n_action]


@functools.partial(jax.jit, static_argnames=("n_action",))
def net_forward(x, packed_params, n_action):
    """Full MLP in a single Pallas call; returns (batch, n_action) f32."""
    assert n_action <= LANE, "n_action must fit in one 128-lane tile"
    batch = x.shape[0]

    # Batch tiling: block of up to 256 rows (multiple of 8); pad batch to a
    # whole number of blocks so every block is full.
    bb = min(_BLOCK_B_MAX, _round_up(batch, 8))
    b_pad = _round_up(batch, bb)

    # Pad features 4 -> 8 and batch -> b_pad with zeros (tiny, off the hot path).
    x8 = jnp.pad(x.astype(jnp.float32),
                 ((0, b_pad - batch), (0, K_PAD_IN - IN_FEATURES)))

    flops = 2 * b_pad * (K_PAD_IN * K_PAD_HID + K_PAD_HID * LANE)
    bytes_accessed = (x8.size + packed_params.size + b_pad * n_action) * 4

    out = pl.pallas_call(
        functools.partial(_mlp_kernel, n_action=n_action),
        out_shape=jax.ShapeDtypeStruct((b_pad, n_action), jnp.float32),
        grid_spec=pltpu.PrefetchScalarGridSpec(
            num_scalar_prefetch=0,
            grid=(b_pad // bb,),
            in_specs=[
                # x: tiled over batch.
                pl.BlockSpec((bb, K_PAD_IN), lambda i: (i, 0)),
                # packed params: same block every step -> resident, one DMA.
                pl.BlockSpec((_PACK_ROWS, LANE), lambda i: (0, 0)),
            ],
            out_specs=pl.BlockSpec((bb, n_action), lambda i: (i, 0)),
        ),
        compiler_params=pltpu.CompilerParams(
            dimension_semantics=("parallel",)),
        cost_estimate=pl.CostEstimate(
            flops=flops, transcendentals=0, bytes_accessed=bytes_accessed),
    )(x8, packed_params)

    return out if b_pad == batch else out[:batch]


def init_params(key, n_action):
    """nn.Linear-style U(-1/sqrt(fan_in), 1/sqrt(fan_in)) init, weights (in, out)."""
    k1, k2, k3, k4 = jax.random.split(key, 4)
    bound1 = 1.0 / jnp.sqrt(float(IN_FEATURES))
    bound2 = 1.0 / jnp.sqrt(float(HIDDEN))
    w1 = jax.random.uniform(k1, (IN_FEATURES, HIDDEN), jnp.float32, -bound1, bound1)
    b1 = jax.random.uniform(k2, (HIDDEN,), jnp.float32, -bound1, bound1)
    w2 = jax.random.uniform(k3, (HIDDEN, n_action), jnp.float32, -bound2, bound2)
    b2 = jax.random.uniform(k4, (n_action,), jnp.float32, -bound2, bound2)
    return w1, b1, w2, b2


def pack_params(w1, b1, w2, b2):
    """Pack fc1/fc2 params into one lane-padded (88,128) f32 buffer (done once)."""
    n_action = w2.shape[1]
    assert n_action <= LANE, "n_action must be <= 128"
    assert HIDDEN <= K_PAD_HID and IN_FEATURES <= K_PAD_IN
    p = jnp.zeros((_PACK_ROWS, LANE), jnp.float32)
    p = p.at[_W1_ROW:_W1_ROW + IN_FEATURES, :HIDDEN].set(w1.astype(jnp.float32))
    p = p.at[_B1_ROW, :HIDDEN].set(jnp.reshape(b1, (HIDDEN,)).astype(jnp.float32))
    p = p.at[_W2_ROW:_W2_ROW + HIDDEN, :n_action].set(w2.astype(jnp.float32))
    p = p.at[_B2_ROW, :n_action].set(jnp.reshape(b2, (n_action,)).astype(jnp.float32))
    return p


def reference_forward(x, w1, b1, w2, b2):
    h = jnp.maximum(x @ w1 + b1, 0.0)
    return h @ w2 + b2


if __name__ == "__main__":
    key = jax.random.PRNGKey(0)
    k_params, k_x, k_x2 = jax.random.split(key, 3)

    n_action = 6
    w1, b1, w2, b2 = init_params(k_params, n_action)
    packed = pack_params(w1, b1, w2, b2)

    # Small-batch check (single grid step).
    batch = 8
    x = jax.random.normal(k_x, (batch, IN_FEATURES), jnp.float32)
    out = jax.block_until_ready(net_forward(x, packed, n_action))
    ref = reference_forward(x, w1, b1, w2, b2)
    assert out.shape == (batch, n_action), out.shape
    assert jnp.allclose(out, ref, atol=1e-4, rtol=1e-4), "mismatch vs reference (B=8)"

    # Larger-batch check exercising the batch grid (2 blocks) + ragged padding.
    batch2 = 300
    x2 = jax.random.normal(k_x2, (batch2, IN_FEATURES), jnp.float32)
    out2 = jax.block_until_ready(net_forward(x2, packed, n_action))
    ref2 = reference_forward(x2, w1, b1, w2, b2)
    assert out2.shape == (batch2, n_action), out2.shape
    assert jnp.allclose(out2, ref2, atol=1e-4, rtol=1e-4), "mismatch vs reference (B=300)"

    print("KERNEL_OK")
</pallas_src>

<mosaic_0001>
module attributes {stable_mosaic.version = 11 : i64} {
  func.func @_mlp_kernel(%arg0: i32, %arg1: memref<8x8xf32, #tpu.memory_space<vmem>>, %arg2: memref<88x128xf32, #tpu.memory_space<vmem>>, %arg3: memref<8x6xf32, #tpu.memory_space<vmem>>) attributes {dimension_semantics = [#tpu.dimension_semantics<parallel>], iteration_bounds = array<i64: 1>, scalar_prefetch = 0 : i64, scratch_operands = 0 : i64, tpu.core_type = #tpu.core_type<tc>, window_params = [{transform_indices = @transform_0, window_bounds = array<i64: 8, 8>}, {pipeline_mode = #tpu.pipeline_mode<synchronous>, transform_indices = @transform_1, window_bounds = array<i64: 88, 128>}, {transform_indices = @transform_2, window_bounds = array<i64: 8, 6>}]} {
    %c0 = arith.constant 0 : index
    %c0_0 = arith.constant 0 : index
    %0 = vector.load %arg1[%c0, %c0_0] : memref<8x8xf32, #tpu.memory_space<vmem>>, vector<8x8xf32>
    %c0_1 = arith.constant 0 : index
    %c0_2 = arith.constant 0 : index
    %1 = vector.load %arg2[%c0_1, %c0_2] : memref<88x128xf32, #tpu.memory_space<vmem>>, vector<8x64xf32>
    %c8 = arith.constant 8 : index
    %c0_3 = arith.constant 0 : index
    %2 = vector.load %arg2[%c8, %c0_3] : memref<88x128xf32, #tpu.memory_space<vmem>>, vector<1x64xf32>
    %cst = arith.constant dense<0.000000e+00> : vector<8x64xf32>
    %3 = tpu.matmul %0, %1, %cst {dimension_numbers = #tpu.dot_dimension_numbers<[1], [0], [0], [1], [0, 0, 1, 1], [], []>} : vector<8x8xf32>, vector<8x64xf32>, vector<8x64xf32> -> vector<8x64xf32>
    %4 = vector.broadcast %2 : vector<1x64xf32> to vector<8x64xf32>
    %5 = arith.addf %3, %4 : vector<8x64xf32>
    %cst_4 = arith.constant 0.000000e+00 : f32
    %6 = vector.broadcast %cst_4 : f32 to vector<8x64xf32>
    %7 = arith.maximumf %5, %6 : vector<8x64xf32>
    %c16 = arith.constant 16 : index
    %c0_5 = arith.constant 0 : index
    %8 = vector.load %arg2[%c16, %c0_5] : memref<88x128xf32, #tpu.memory_space<vmem>>, vector<64x128xf32>
    %cst_6 = arith.constant dense<0.000000e+00> : vector<8x128xf32>
    %9 = tpu.matmul %7, %8, %cst_6 {dimension_numbers = #tpu.dot_dimension_numbers<[1], [0], [0], [1], [0, 0, 1, 1], [], []>} : vector<8x64xf32>, vector<64x128xf32>, vector<8x128xf32> -> vector<8x128xf32>
    %c80 = arith.constant 80 : index
    %c0_7 = arith.constant 0 : index
    %10 = vector.load %arg2[%c80, %c0_7] : memref<88x128xf32, #tpu.memory_space<vmem>>, vector<1x128xf32>
    %11 = vector.broadcast %10 : vector<1x128xf32> to vector<8x128xf32>
    %12 = arith.addf %9, %11 : vector<8x128xf32>
    %13 = vector.extract_strided_slice %12 {offsets = [0, 0], sizes = [8, 6], strides = [1, 1]} : vector<8x128xf32> to vector<8x6xf32>
    %c0_8 = arith.constant 0 : index
    %c0_9 = arith.constant 0 : index
    %14 = vector.load %arg3[%c0_8, %c0_9] : memref<8x6xf32, #tpu.memory_space<vmem>>, vector<8x6xf32>
    tpu.vector_store %arg3[%c0_8, %c0_9], %13 {strides = array<i32>} : memref<8x6xf32, #tpu.memory_space<vmem>>, vector<8x6xf32>,
    return
  }
  func.func @transform_0(%arg0: i32) -> (i32, i32) {
    %c0_i32 = arith.constant 0 : i32
    %c0_i32_0 = arith.constant 0 : i32
    return %arg0, %c0_i32 : i32, i32
  }
  func.func @transform_1(%arg0: i32) -> (i32, i32) {
    %c0_i32 = arith.constant 0 : i32
    %c0_i32_0 = arith.constant 0 : i32
    %c0_i32_1 = arith.constant 0 : i32
    return %c0_i32, %c0_i32_0 : i32, i32
  }
  func.func @transform_2(%arg0: i32) -> (i32, i32) {
    %c0_i32 = arith.constant 0 : i32
    %c0_i32_0 = arith.constant 0 : i32
    return %arg0, %c0_i32 : i32, i32
  }
}

</mosaic_0001>

<bundles_post_ra>
// kernel: net_forward.1
= control target key start
LH: loop header
LB: loop body
LE: loop exit
PB: predicated region body
PF: predicated region fallthrough
CT: control target
= control target key end

     0   :  { %7 = vsyncpa [#allocation3], 0  ;;  %s198_s0 = inlined_call_operand.vmem [shape: f32[8,8], index: 0, kind: input, shape index: {}]   ;;  %s199_s1 = inlined_call_operand.hbm [shape: f32[88,128], index: 1, kind: input, shape index: {}]   ;;  %s200_s2 = inlined_call_operand.hbm [shape: f32[8,6], index: 2, kind: output, shape index: {}]  }
   0x1   :  { %8 = vsyncpa [#allocation4], 0  ;;  %s15_s11 = sshll.u32 %s199_s1, 4  ;;  %s170_s12 = smov [#allocation2]   ;;  %s16_s11 = int_to_ptr.hbm [resolvable:$true] %s15_s11 }
   0x2   :  { %s17_s13 = sshll.u32 %s170_s12, 4  ;;  %s171_s14 = smov 128   ;;  %s18_s13 = int_to_ptr.vmem [resolvable:$true] %s17_s13 }
   0x3   :  { %s172_s15 = smov 8  }
   0x4   :  { %23 = dma.hbm_to_vmem [thread:$0]  %s16_s11, 1408, %s18_s13, [#allocation3], %s171_s14, %s171_s14, %s172_s15  }
   0x5   :  { %166 = dma.done.wait [#allocation3], 1408  }
   0x6   :  { %167 = vsyncadd [#allocation3], 4294965888  ;;  %vm32_vm0 = vcmask 64512   ;;  %v29_v0 = vld [vmem:[#allocation2] sm:$0xff]  ;;  %v64_v2 = vld [vmem:[#allocation2 + $0x48] sm:$0xff]  ;;  %vm67_vm1 = vcmask 523264  }
   0x7   :  { %v28_v1 = vld [vmem:[%s198_s0] sm:$0xff]  ;;  %51 = vmatpush.msra.mxu0 %v29_v0  ;;  %79 = vmatpush.msra.mxu1 %v64_v2  ;;  %v62_v4 = vld [vmem:[#allocation2 + $0x38] sm:$0xff]  ;;  %v61_v5 = vld [vmem:[#allocation2 + $0x30] sm:$0xff]  ;;  %s173_s0 = smov [#allocation5]   ;;  %s100_s20 = sshll.u32 %s200_s2, 4  ;;  %vm91_vm2 = vcmask 48128   ;;  %s101_s20 = int_to_ptr.hbm [resolvable:$true] %s100_s20 }
   0x8   :  { %v63_v3 = vld [vmem:[#allocation2 + $0x40] sm:$0xff]  ;;  %110 = vmatmul.msk.f32.vlgmr.msra.gmra.mxu0 %vm32_vm0, %v28_v1  ;;  %v60_v6 = vld [vmem:[#allocation2 + $0x28] sm:$0xff]  ;;  %v58_v8 = vld [vmem:[#allocation2 + $0x18] sm:$0xff]  ;;  %s98_s1 = sshll.u32 %s173_s0, 4  ;;  %s99_s1 = int_to_ptr.vmem [resolvable:$true] %s98_s1 }
   0x9   :  { %80 = vmatpush.msra.mxu1 %v63_v3  ;;  %v59_v7 = vld [vmem:[#allocation2 + $0x20] sm:$0xff]  ;;  %v57_v9 = vld [vmem:[#allocation2 + $0x10] sm:$0xff]  ;;  %v116_v10 = vld [vmem:[#allocation2 + $0x8] ss:$0 sm:$0xff] }
   0xa   :  { %v117_v14 = vld [vmem:[#allocation2 + $0x50] ss:$0 sm:$0xff] }
   0xb   :  { %81 = vmatpush.msra.mxu1 %v62_v4 }
   0xd   :  { %82 = vmatpush.msra.mxu1 %v61_v5 }
   0xf   :  { %83 = vmatpush.msra.mxu1 %v60_v6 }
  0x11   :  { %84 = vmatpush.msra.mxu1 %v59_v7 }
  0x13   :  { %85 = vmatpush.msra.mxu1 %v58_v8 }
  0x15   :  { %86 = vmatpush.msra.mxu1 %v57_v9 }
  0x85   :  { %v53_v11 = vpop.f32.mrf.mxu0 }
  0x86   :  { %v54_v12 = vadd.f32 %v116_v10, %v53_v11 }
  0x88   :  { %v56_v13 = vmax.f32 %v54_v12, 0.0 }
  0x8a   :  { %111 = vmatmul.msk.f32.vlgmr.msra.gmra.mxu1 %vm67_vm1, %v56_v13 }
 0x107   :  { %v88_v15 = vpop.f32.mrf.mxu1 }
 0x108   :  { %v89_v16 = vadd.f32 %v117_v14, %v88_v15 }
 0x10a   :  { %92 = vst.msk [vmem:[#allocation5] sm:$0xff] %vm91_vm2, %v89_v16 }
 0x10b   :  { %103 = dma.vmem_to_hbm [thread:$0]  %s99_s1, 128, %s101_s20, [#allocation4]  }
 0x10c   :  { %168 = dma.done.wait [#allocation4], 128  }
 0x10d   :  { %169 = vsyncadd [#allocation4], 4294967168 }
 0x10e   :  { %108 = vsyncpa [#allocation3], 1 }
 0x10f   :  { %109 = vsyncpa [#allocation4], 1 }

</bundles_post_ra>
